<compile_context>
chip_gen: v6e
topology: v6e:2x2x1
jax: 0.10.0
libtpu: 0.0.40
codegen_flags: <defaults>
</compile_context>

<pallas_src>
import functools

import jax
import jax.numpy as jnp
from jax.experimental import pallas as pl
from jax.experimental.pallas import tpu as pltpu


def _slice_kernel(x_hbm, o_hbm, dma_sem, *, start_index: int, chunk_bounds):
    """Copy one contiguous (size, C) chunk of one batch row, HBM -> HBM.

    The token-axis offset lives entirely in the HBM-side source slice of the
    DMA, so no rows before `start_index` are ever touched and nothing is
    staged through VMEM.
    """
    b = pl.program_id(0)
    c = pl.program_id(1)

    def copy_chunk(off, size):
        cp = pltpu.make_async_copy(
            x_hbm.at[b, pl.ds(start_index + off, size), :],
            o_hbm.at[b, pl.ds(off, size), :],
            dma_sem,
        )
        cp.start()
        cp.wait()

    if len(chunk_bounds) == 1:
        off, size = chunk_bounds[0]
        copy_chunk(off, size)
    else:
        # Chunks can have different static sizes (odd out_n split), so select
        # the statically-shaped DMA with pl.when on the chunk grid index.
        for idx, (off, size) in enumerate(chunk_bounds):
            @pl.when(c == idx)
            def _(off=off, size=size):
                copy_chunk(off, size)


def slice_tokens(x: jax.Array, start_index: int = 1) -> jax.Array:
    """Pallas equivalent of ``x[:, start_index:]`` for a (B, N, C) tensor."""
    if start_index < 0:
        raise ValueError("start_index must be >= 0")
    B, N, C = x.shape
    start_index = int(start_index)
    out_n = N - start_index
    if out_n <= 0:
        return jnp.zeros((B, 0, C), dtype=x.dtype)

    # One big contiguous DMA per batch row.  Only when B == 1 do we split the
    # row into two contiguous chunks so both v7x TensorCores have work.
    if B == 1 and out_n >= 2:
        half = out_n // 2
        chunk_bounds = ((0, half), (half, out_n - half))
    else:
        chunk_bounds = ((0, out_n),)
    num_chunks = len(chunk_bounds)

    kernel = functools.partial(
        _slice_kernel, start_index=start_index, chunk_bounds=chunk_bounds)

    itemsize = jnp.dtype(x.dtype).itemsize
    return pl.pallas_call(
        kernel,
        out_shape=jax.ShapeDtypeStruct((B, out_n, C), x.dtype),
        grid_spec=pltpu.PrefetchScalarGridSpec(
            num_scalar_prefetch=0,
            grid=(B, num_chunks),
            # Raw HBM refs on both sides; the slice offset is applied by the
            # DMA itself and the result is written directly to the output.
            in_specs=[pl.BlockSpec(memory_space=pl.ANY)],
            out_specs=pl.BlockSpec(memory_space=pl.ANY),
            scratch_shapes=[pltpu.SemaphoreType.DMA(())],
        ),
        compiler_params=pltpu.CompilerParams(
            dimension_semantics=("parallel", "parallel"),
        ),
        cost_estimate=pl.CostEstimate(
            flops=0,
            transcendentals=0,
            bytes_accessed=2 * B * out_n * C * itemsize,
        ),
    )(x)


if __name__ == "__main__":
    key = jax.random.PRNGKey(0)

    # Small SAM/ViT-like token tensor: batch=2, tokens=17 (1 CLS + 16 patch),
    # hidden=128 (lane-dense channel width, like production ViTs).
    B, N, C = 2, 17, 128
    x = jax.random.normal(key, (B, N, C), dtype=jnp.float32)

    out = jax.block_until_ready(slice_tokens(x, start_index=1))
    ref = x[:, 1:]
    assert out.shape == ref.shape, (out.shape, ref.shape)
    assert out.dtype == ref.dtype
    assert bool(jnp.array_equal(out, ref))

    # Extra small shapes:
    #  * narrow channels (no lane constraint since there is no VMEM block),
    #  * bf16 with odd start offset (dtype packing handled by the DMA engine),
    #  * B == 1 path (row split into two chunks, odd out_n),
    #  * different start_index.
    for (b2, n2, c2, s2, dt) in [
        (2, 9, 32, 1, jnp.float32),
        (2, 33, 128, 1, jnp.bfloat16),
        (1, 13, 64, 2, jnp.float32),
        (1, 18, 128, 1, jnp.bfloat16),
    ]:
        x2 = jax.random.normal(jax.random.PRNGKey(1), (b2, n2, c2)).astype(dt)
        o2 = jax.block_until_ready(slice_tokens(x2, start_index=s2))
        r2 = x2[:, s2:]
        assert o2.shape == r2.shape and o2.dtype == r2.dtype
        assert bool(jnp.array_equal(o2, r2))

    print("KERNEL_OK")
</pallas_src>

<mosaic_0001>
module attributes {stable_mosaic.version = 11 : i64} {
  func.func @_slice_kernel(%arg0: i32, %arg1: i32, %arg2: memref<2x17x128xf32, #tpu.memory_space<any>>, %arg3: memref<2x16x128xf32, #tpu.memory_space<any>>, %arg4: memref<!tpu.dma_semaphore, #tpu.memory_space<semaphore_mem>>) attributes {dimension_semantics = [#tpu.dimension_semantics<parallel>, #tpu.dimension_semantics<parallel>], iteration_bounds = array<i64: 2, 1>, scalar_prefetch = 0 : i64, scratch_operands = 1 : i64, tpu.core_type = #tpu.core_type<tc>, window_params = [{}, {}]} {
    %c1_i32 = arith.constant 1 : i32
    %c0_i32 = arith.constant 0 : i32
    %0 = tpu.memref_slice %arg2[%arg0, %c1_i32, %c0_i32] : memref<2x17x128xf32, #tpu.memory_space<any>> -> memref<1x16x128xf32, #tpu.memory_space<any>>
    %1 = tpu.memref_squeeze %0 : memref<1x16x128xf32, #tpu.memory_space<any>> -> memref<16x128xf32, #tpu.memory_space<any>>
    %c0_i32_0 = arith.constant 0 : i32
    %c0_i32_1 = arith.constant 0 : i32
    %2 = tpu.memref_slice %arg3[%arg0, %c0_i32_0, %c0_i32_1] : memref<2x16x128xf32, #tpu.memory_space<any>> -> memref<1x16x128xf32, #tpu.memory_space<any>>
    %3 = tpu.memref_squeeze %2 : memref<1x16x128xf32, #tpu.memory_space<any>> -> memref<16x128xf32, #tpu.memory_space<any>>
    tpu.enqueue_dma source(%1 : memref<16x128xf32, #tpu.memory_space<any>>) target(%3 : memref<16x128xf32, #tpu.memory_space<any>>) target_semaphore(%arg4 : memref<!tpu.dma_semaphore, #tpu.memory_space<semaphore_mem>>)
    %c1_i32_2 = arith.constant 1 : i32
    %c0_i32_3 = arith.constant 0 : i32
    %4 = tpu.memref_slice %arg2[%arg0, %c1_i32_2, %c0_i32_3] : memref<2x17x128xf32, #tpu.memory_space<any>> -> memref<1x16x128xf32, #tpu.memory_space<any>>
    %5 = tpu.memref_squeeze %4 : memref<1x16x128xf32, #tpu.memory_space<any>> -> memref<16x128xf32, #tpu.memory_space<any>>
    %c0_i32_4 = arith.constant 0 : i32
    %c0_i32_5 = arith.constant 0 : i32
    %6 = tpu.memref_slice %arg3[%arg0, %c0_i32_4, %c0_i32_5] : memref<2x16x128xf32, #tpu.memory_space<any>> -> memref<1x16x128xf32, #tpu.memory_space<any>>
    %7 = tpu.memref_squeeze %6 : memref<1x16x128xf32, #tpu.memory_space<any>> -> memref<16x128xf32, #tpu.memory_space<any>>
    tpu.wait_dma2 semaphore(%arg4 : memref<!tpu.dma_semaphore, #tpu.memory_space<semaphore_mem>>) src(%5 : memref<16x128xf32, #tpu.memory_space<any>>) dst(%7 : memref<16x128xf32, #tpu.memory_space<any>>)
    return
  }
}

</mosaic_0001>

<bundles_post_ra>
// kernel: tpu_custom_call.1
= control target key start
LH: loop header
LB: loop body
LE: loop exit
PB: predicated region body
PF: predicated region fallthrough
CT: control target
= control target key end

     0   :  { %s130_s6 = smov 0   ;;  %s132_s7 = smov 0   ;;  %s149_s0 = inlined_call_operand.vmem [shape: f32[2,17,128], index: 0, kind: input, shape index: {}]   ;;  %s150_s1 = inlined_call_operand.hbm [shape: f32[2,16,128], index: 1, kind: output, shape index: {}]  }
   0x1 LB: > { %s17_s8 = sadd.s32 1, %s114_s6  ;;  %s47_s9 = smul.u32 24, %s114_s6  ;;  %s118_s7 = sphi %s132_s7, %s11_s7   ;;  %s114_s6 = sphi %s130_s6, %s151_s6  }
   0x2   : > { %p19_p0 = scmp.ge.s32.totalorder %s17_s8, 2  ;;  %s63_s10 = sshll.u32 %s114_s6, 8 }
   0x3   : > { %s48_s13 = scalar_lea.vmem %s149_s0, %s47_s9  ;;  %s26_s17 = scalar_lea.hbm %s150_s1, %s63_s10 }
   0x4   : > { %s153_s8 = smov (%p19_p0, %s17_s8), 0  ;;  %s49_s14 = scalar_lea.vmem %s48_s13, 1 }
   0x5   : > { %s34_s18 = sshll.u32 %s49_s14, 4  ;;  %s82_s22 = sshll.u32 %s149_s0, 4  ;;  %s35_s18 = int_to_ptr.vmem [resolvable:$true] %s34_s18  ;;  %s83_s22 = int_to_ptr.vmem [resolvable:$false] %s82_s22 }
   0x6   : > { %s80_s19 = scalar_lea.vmem %s35_s18, 256  ;;  %s84_s23 = scalar_lea.vmem %s83_s22, 768 }
   0x7   : > { %p81_p1 = scmp.ne.s32.totalorder %s35_s18, %s80_s19  ;;  %p85_p2 = scmp.lt.s32.totalorder %s35_s18, %s83_s22 }
   0x8   : > { %p86_p3 = scmp.lt.s32.totalorder %s84_s23, %s80_s19 }
   0xa   : > { %p87_p4 = por %p86_p3, %p85_p2 }
   0xc   : > { %p88_p5 = pnand %p87_p4, %p81_p1 }
   0xe   : > { %91 = shalt.err (!%p88_p5)  }
   0xf   : > { %37 = dma.vmem_to_hbm [thread:$0]  %s35_s18, 256, %s26_s17, [#allocation2] }
  0x10   : > { %110 = dma.done.wait [#allocation2], 256 }
  0x11   : > { %111 = vsyncadd [#allocation2], 4294967040  ;;  %s11_s7 = sadd.s32 1, %s118_s7   ;;  %s151_s6 = smov %s153_s8 }
  0x12   : > { %p8_p6 = scmp.ge.s32.totalorder %s11_s7, 2  }
  0x14   :  { %10 = sbr.rel (!%p8_p6) target bundleno = 1 (0x1), region = 25 }
  0x19   :  { %41 = vsyncmov [#allocation2] }
  0x1c   :  { %s42_s24 = vpop.sfrf %41 }
  0x1d   :  { %p62_p7 = scmp.ne.s32.totalorder %s42_s24, 0 }
  0x1f   :  { %46 = shalt.err (%p62_p7)  }

</bundles_post_ra>
